<compile_context>
chip_gen: v6e
topology: v6e:2x2x1
jax: 0.10.0
libtpu: 0.0.40
codegen_flags: <defaults>
</compile_context>

<pallas_src>
import jax
import jax.numpy as jnp
from jax.experimental import pallas as pl
from jax.experimental.pallas import tpu as pltpu


TM_DEFAULT = 512   # M tile (rows of bs*nvars), multiple of 8


def _round_up(x, m):
    return ((x + m - 1) // m) * m


def _pick_tm(M, tm):
    """Choose the M tile: big tiles for large M, >=2 blocks for megacore."""
    assert tm % 8 == 0
    if M > tm:
        return tm
    # A single M block leaves the 2nd TensorCore idle on v7x; split when M is
    # large enough to yield two >=8-row blocks.
    if M >= 16:
        half = _round_up((M + 1) // 2, 8)
        if half < M:
            return half
    return M   # full-dim block (always a legal block shape)


def _head_kernel(x_ref, w_ref, b_ref, o_ref):
    # x_ref : [tm, K]  (bf16) streamed over the M grid axis
    # w_ref : [K,  Np] (bf16) resident -- constant index_map, loaded once
    # b_ref : [1,  Np] (f32)  resident
    # o_ref : [tm, Np] written once per M tile
    acc = jnp.dot(x_ref[...], w_ref[...], preferred_element_type=jnp.float32)
    o_ref[...] = (acc + b_ref[...]).astype(o_ref.dtype)


def prepare_pretrain_head_params(weight, bias, *, compute_dtype=jnp.bfloat16):
    """One-time parameter prep (hoisted out of the per-call path).

    weight: [seq_len, K] (nn.Linear layout), bias: [seq_len]
    Returns w_t: [K, Np] transposed, N-padded to a multiple of 128, cast to
    compute_dtype (bf16 by default); b2d: [1, Np] f32.
    K is intentionally NOT padded: the kernel uses full-K blocks, so no host
    pad of x is ever needed.
    """
    seq_len, K = weight.shape
    Np = _round_up(seq_len, 128)
    w_t = jnp.pad(weight.T, ((0, 0), (0, Np - seq_len))).astype(compute_dtype)
    b2d = jnp.pad(bias, (0, Np - seq_len)).astype(jnp.float32).reshape(1, Np)
    return w_t, b2d


def patchtst_pretrain_head(x, w_t, b2d, seq_len, *, tm=TM_DEFAULT):
    """x: [bs, nvars, d_model, num_patch] -> [bs, seq_len, nvars].

    w_t / b2d come from prepare_pretrain_head_params (pre-transposed, padded,
    bf16).
    """
    bs, nvars, d_model, num_patch = x.shape
    K = d_model * num_patch
    M = bs * nvars
    Kw, Np = w_t.shape
    assert Kw == K, (Kw, K)
    assert b2d.shape == (1, Np), b2d.shape

    # Dropout is identity at inference (see module-level TODO).

    # flatten(start_dim=2): row-major reshape, index = d * num_patch + p.
    x2d = x.reshape(M, K)
    if x2d.dtype != w_t.dtype:
        # bf16 GEMM operands (f32 accumulate inside the kernel).  XLA typically
        # fuses this cast with the upstream producer of x.
        x2d = x2d.astype(w_t.dtype)

    tm_eff = _pick_tm(M, tm)
    grid = (pl.cdiv(M, tm_eff),)

    cost = pl.CostEstimate(
        flops=2 * M * K * Np,
        bytes_accessed=(M * K * x2d.dtype.itemsize        # x streamed once
                        + K * Np * w_t.dtype.itemsize      # weight loaded once
                        + Np * 4                           # bias
                        + M * Np * x.dtype.itemsize),      # output written once
        transcendentals=0,
    )

    out2d = pl.pallas_call(
        _head_kernel,
        out_shape=jax.ShapeDtypeStruct((M, Np), x.dtype),
        grid_spec=pltpu.PrefetchScalarGridSpec(
            num_scalar_prefetch=0,
            grid=grid,
            in_specs=[
                pl.BlockSpec((tm_eff, K), lambda i: (i, 0)),   # x tile
                pl.BlockSpec((K, Np), lambda i: (0, 0)),       # resident weight
                pl.BlockSpec((1, Np), lambda i: (0, 0)),       # resident bias
            ],
            out_specs=pl.BlockSpec((tm_eff, Np), lambda i: (i, 0)),
        ),
        compiler_params=pltpu.CompilerParams(
            dimension_semantics=("parallel",),        # megacore over M tiles
            vmem_limit_bytes=48 * 1024 * 1024,        # within v7x 64 MiB phys
        ),
        cost_estimate=cost,
    )(x2d, w_t, b2d)

    # Lane-dense kernel output [M, Np]; cheap epilogue glue in XLA.
    out = out2d[:, :seq_len].reshape(bs, nvars, seq_len)   # [bs, nvars, seq_len]
    return jnp.transpose(out, (0, 2, 1))                   # [bs, seq_len, nvars]


def _reference(x, weight, bias):
    bs, nvars, d_model, num_patch = x.shape
    x2 = x.reshape(bs, nvars, d_model * num_patch)
    y = jnp.einsum("bvk,sk->bvs", x2, weight) + bias
    return jnp.transpose(y, (0, 2, 1))


if __name__ == "__main__":
    # Small, module-consistent shapes.
    bs, nvars, d_model, num_patch, seq_len = 2, 4, 16, 8, 32
    K = d_model * num_patch

    key = jax.random.PRNGKey(0)
    kx, kw, kb = jax.random.split(key, 3)

    x = jax.random.normal(kx, (bs, nvars, d_model, num_patch), dtype=jnp.float32)

    # Deterministic nn.Linear-style init: U(-1/sqrt(K), 1/sqrt(K))
    bound = 1.0 / (K ** 0.5)
    weight = jax.random.uniform(kw, (seq_len, K), jnp.float32, -bound, bound)
    bias = jax.random.uniform(kb, (seq_len,), jnp.float32, -bound, bound)

    # One-time parameter prep (transpose + N-pad + bf16 cast), hoisted out of
    # the forward path.
    w_t, b2d = prepare_pretrain_head_params(weight, bias)

    out = patchtst_pretrain_head(x, w_t, b2d, seq_len)
    out = jax.block_until_ready(out)

    assert out.shape == (bs, seq_len, nvars), out.shape

    # Compare against the f32 reference; tolerance accounts for the bf16
    # operand rounding (f32 accumulation is kept).
    ref = _reference(x, weight, bias)
    assert jnp.allclose(out, ref, atol=5e-2, rtol=5e-2), (
        "mismatch vs reference",
        float(jnp.max(jnp.abs(out - ref))),
    )

    print("KERNEL_OK")
</pallas_src>

<mosaic_0001>
module attributes {stable_mosaic.version = 11 : i64} {
  func.func @_head_kernel(%arg0: i32, %arg1: memref<8x128xbf16, #tpu.memory_space<vmem>>, %arg2: memref<128x128xbf16, #tpu.memory_space<vmem>>, %arg3: memref<1x128xf32, #tpu.memory_space<vmem>>, %arg4: memref<8x128xf32, #tpu.memory_space<vmem>>) attributes {dimension_semantics = [#tpu.dimension_semantics<parallel>], iteration_bounds = array<i64: 1>, scalar_prefetch = 0 : i64, scratch_operands = 0 : i64, tpu.core_type = #tpu.core_type<tc>, window_params = [{transform_indices = @transform_0, window_bounds = array<i64: 8, 128>}, {pipeline_mode = #tpu.pipeline_mode<synchronous>, transform_indices = @transform_1, window_bounds = array<i64: 128, 128>}, {pipeline_mode = #tpu.pipeline_mode<synchronous>, transform_indices = @transform_2, window_bounds = array<i64: 1, 128>}, {transform_indices = @transform_3, window_bounds = array<i64: 8, 128>}]} {
    %c0 = arith.constant 0 : index
    %c0_0 = arith.constant 0 : index
    %0 = vector.load %arg1[%c0, %c0_0] : memref<8x128xbf16, #tpu.memory_space<vmem>>, vector<8x128xbf16>
    %c0_1 = arith.constant 0 : index
    %c0_2 = arith.constant 0 : index
    %1 = vector.load %arg2[%c0_1, %c0_2] : memref<128x128xbf16, #tpu.memory_space<vmem>>, vector<128x128xbf16>
    %cst = arith.constant dense<0.000000e+00> : vector<8x128xf32>
    %2 = tpu.matmul %0, %1, %cst {dimension_numbers = #tpu.dot_dimension_numbers<[1], [0], [0], [1], [0, 0, 1, 1], [], []>} : vector<8x128xbf16>, vector<128x128xbf16>, vector<8x128xf32> -> vector<8x128xf32>
    %c0_3 = arith.constant 0 : index
    %c0_4 = arith.constant 0 : index
    %3 = vector.load %arg3[%c0_3, %c0_4] : memref<1x128xf32, #tpu.memory_space<vmem>>, vector<1x128xf32>
    %4 = vector.broadcast %3 : vector<1x128xf32> to vector<8x128xf32>
    %5 = arith.addf %2, %4 : vector<8x128xf32>
    %c0_5 = arith.constant 0 : index
    %c0_6 = arith.constant 0 : index
    %6 = vector.load %arg4[%c0_5, %c0_6] : memref<8x128xf32, #tpu.memory_space<vmem>>, vector<8x128xf32>
    tpu.vector_store %arg4[%c0_5, %c0_6], %5 {strides = array<i32>} : memref<8x128xf32, #tpu.memory_space<vmem>>, vector<8x128xf32>,
    return
  }
  func.func @transform_0(%arg0: i32) -> (i32, i32) {
    %c0_i32 = arith.constant 0 : i32
    %c0_i32_0 = arith.constant 0 : i32
    return %arg0, %c0_i32 : i32, i32
  }
  func.func @transform_1(%arg0: i32) -> (i32, i32) {
    %c0_i32 = arith.constant 0 : i32
    %c0_i32_0 = arith.constant 0 : i32
    %c0_i32_1 = arith.constant 0 : i32
    return %c0_i32, %c0_i32_0 : i32, i32
  }
  func.func @transform_2(%arg0: i32) -> (i32, i32) {
    %c0_i32 = arith.constant 0 : i32
    %c0_i32_0 = arith.constant 0 : i32
    %c0_i32_1 = arith.constant 0 : i32
    return %c0_i32, %c0_i32_0 : i32, i32
  }
  func.func @transform_3(%arg0: i32) -> (i32, i32) {
    %c0_i32 = arith.constant 0 : i32
    %c0_i32_0 = arith.constant 0 : i32
    return %arg0, %c0_i32 : i32, i32
  }
}

</mosaic_0001>

<bundles_post_ra>
// kernel: tpu_custom_call.1
= control target key start
LH: loop header
LB: loop body
LE: loop exit
PB: predicated region body
PF: predicated region fallthrough
CT: control target
= control target key end

     0   :  { %8 = vsyncpa [#allocation3], 0  ;;  %s329_s0 = inlined_call_operand.hbm [shape: bf16[8,128], index: 0, kind: input, shape index: {}]   ;;  %s330_s1 = inlined_call_operand.hbm [shape: bf16[128,128], index: 1, kind: input, shape index: {}]   ;;  %s331_s2 = inlined_call_operand.vmem [shape: f32[1,128], index: 2, kind: input, shape index: {}]   ;;  %s332_s3 = inlined_call_operand.hbm [shape: f32[8,128], index: 3, kind: output, shape index: {}]  }
   0x1   :  { %9 = vsyncpa [#allocation6], 0 }
   0x2   :  { %10 = vsyncpa [#allocation4], 0  ;;  %s290_s12 = smov [#allocation2]   ;;  %s291_s14 = smov [#allocation5]  }
   0x3   :  { %s17_s13 = sshll.u32 %s290_s12, 4  ;;  %s26_s15 = sshll.u32 %s291_s14, 4  ;;  %s18_s13 = int_to_ptr.vmem [resolvable:$true] %s17_s13  ;;  %s27_s15 = int_to_ptr.vmem [resolvable:$true] %s26_s15 }
   0x4   :  { %s232_s16 = scalar_lea.vmem %s18_s13, 64  ;;  %p237_p1 = scmp.lt.s32.totalorder %s18_s13, %s18_s13 }
   0x5   :  { %p233_p0 = scmp.ne.s32.totalorder %s18_s13, %s232_s16  ;;  %p238_p2 = scmp.lt.s32.totalorder %s232_s16, %s232_s16 }
   0x7   :  { %p239_p3 = por %p238_p2, %p237_p1 }
   0x9   :  { %p240_p4 = pnand %p239_p3, %p233_p0 }
   0xb   :  { %243 = shalt.err (!%p240_p4)
}
   0xc   :  { %20 = dma.hbm_to_vmem [thread:$0]  %s329_s0, 64, %s18_s13, [#allocation3]  }
   0xd   :  { %s252_s19 = scalar_lea.vmem %s27_s15, 1024  ;;  %p257_p6 = scmp.lt.s32.totalorder %s27_s15, %s27_s15 }
   0xe   :  { %p253_p5 = scmp.ne.s32.totalorder %s27_s15, %s252_s19  ;;  %p258_p7 = scmp.lt.s32.totalorder %s252_s19, %s252_s19 }
  0x10   :  { %p259_p8 = por %p258_p7, %p257_p6 }
  0x12   :  { %p260_p9 = pnand %p259_p8, %p253_p5 }
  0x14   :  { %263 = shalt.err (!%p260_p9)
}
  0x15   :  { %s292_s20 = smov 64   ;;  %s293_s21 = smov 4  }
  0x16   :  { %32 = dma.hbm_to_vmem [thread:$0]  %s330_s1, 1024, %s27_s15, [#allocation6], %s292_s20, %s292_s20, %s293_s21  }
  0x17   :  { %284 = dma.done.wait [#allocation3], 64  }
  0x18   :  { %285 = vsyncadd [#allocation3], 4294967232 }
  0x19   :  { %286 = dma.done.wait [#allocation6], 1024  }
  0x1a   :  { %287 = vsyncadd [#allocation6], 4294966272  ;;  %v294_v0 = vmov 0.0   ;;  %vm295_vm0 = vmmov 0   ;;  %v216_v1 = vld [vmem:[#allocation5 + $0x38] sm:$0xff]   ;;  %v217_v2 = vld [vmem:[#allocation5 + $0x30] sm:$0xff]  }
  0x1b   :  { %189 = vmatprep.subr.bf16.mxu0 %v294_v0  ;;  %205 = vmatprep.mubr.msk.bf16.mxu0 %vm295_vm0, %v294_v0  ;;  %v218_v3 = vld [vmem:[#allocation5 + $0x28] sm:$0xff]   ;;  %v219_v4 = vld [vmem:[#allocation5 + $0x20] sm:$0xff]   ;;  %v220_v5 = vld [vmem:[#allocation5 + $0x18] sm:$0xff]   ;;  %s296_s24 = smov [#allocation7]  }
  0x1c   :  { %190 = vmatpush3.bf16.msra.mxu0 %v216_v1  ;;  %v221_v6 = vld [vmem:[#allocation5 + $0x10] sm:$0xff]   ;;  %v222_v7 = vld [vmem:[#allocation5 + $0x8] sm:$0xff]   ;;  %v223_v8 = vld [vmem:[#allocation5] sm:$0xff]   ;;  %s161_s25 = sshll.u32 %s296_s24, 4  ;;  %s162_s25 = int_to_ptr.vmem [resolvable:$true] %s161_s25 }
  0x1d   :  { %191 = vmatprep.subr.bf16.mxu0 %v294_v0  ;;  %v42_v9 = vld [vmem:[#allocation2] sm:$0xf]  ;;  %s264_s26 = scalar_lea.vmem %s162_s25, 128  ;;  %p269_p11 = scmp.lt.s32.totalorder %s162_s25, %s162_s25 }
  0x1e   :  { %v171_v10 = vld [vmem:[%s331_s2] ss:$0 sm:$0xff]  ;;  %p265_p10 = scmp.ne.s32.totalorder %s162_s25, %s264_s26  ;;  %p270_p12 = scmp.lt.s32.totalorder %s264_s26, %s264_s26 }
  0x20   :  { %192 = vmatpush3.bf16.msra.mxu0 %v217_v2  ;;  %p271_p13 = por %p270_p12, %p269_p11 }
  0x21   :  { %193 = vmatprep.subr.bf16.mxu0 %v294_v0 }
  0x22   :  { %p272_p0 = pnand %p271_p13, %p265_p10 }
  0x24   :  { %194 = vmatpush3.bf16.msra.mxu0 %v218_v3 }
  0x25   :  { %195 = vmatprep.subr.bf16.mxu0 %v294_v0 }
  0x28   :  { %196 = vmatpush3.bf16.msra.mxu0 %v219_v4 }
  0x29   :  { %197 = vmatprep.subr.bf16.mxu0 %v294_v0 }
  0x2c   :  { %198 = vmatpush3.bf16.msra.mxu0 %v220_v5 }
  0x2d   :  { %199 = vmatprep.subr.bf16.mxu0 %v294_v0 }
  0x30   :  { %200 = vmatpush3.bf16.msra.mxu0 %v221_v6 }
  0x31   :  { %201 = vmatprep.subr.bf16.mxu0 %v294_v0 }
  0x34   :  { %202 = vmatpush3.bf16.msra.mxu0 %v222_v7 }
  0x35   :  { %203 = vmatprep.subr.bf16.mxu0 %v294_v0 }
  0x38   :  { %204 = vmatpush3.bf16.msra.mxu0 %v223_v8 }
  0x3b   :  { %206 = vmatmul.mubr.bf16.vlgmr.msra.gmra.mxu0 %v42_v9 }
  0xfb   :  { %v148_v11 = vpop.f32.mrf.mxu0 }
  0xfc   :  { %v149_v12 = vadd.f32 %v171_v10, %v148_v11 }
  0xfd   :  { %v207_v13 = vpop.f32.mrf.mxu0 }
  0xfe   :  { %154 = vst [vmem:[#allocation7] sm:$0xff] %v149_v12 }
  0xff   :  { %v151_v14 = vpop.f32.mrf.mxu0 }
 0x100   :  { %275 = shalt.err (!%p272_p0)
}
 0x101   :  { %164 = dma.vmem_to_hbm [thread:$0]  %s162_s25, 128, %s332_s3, [#allocation4]   ;;  %v208_v15 = vpop.f32.mrf.mxu0 }
 0x102   :  { %288 = dma.done.wait [#allocation4], 128  }
 0x103   :  { %289 = vsyncadd [#allocation4], 4294967168 }
 0x104   :  { %168 = vsyncpa [#allocation3], 1 }
 0x105   :  { %169 = vsyncpa [#allocation6], 1 }
 0x106   :  { %170 = vsyncpa [#allocation4], 1 }

</bundles_post_ra>
